<compile_context>
chip_gen: v7x
topology: tpu7x:2x2x1
jax: 0.10.0
libtpu: 0.0.40
codegen_flags: <defaults>
</compile_context>

<pallas_src>
import functools

import numpy as np

import jax
import jax.numpy as jnp
from jax.experimental import pallas as pl
from jax.experimental.pallas import tpu as pltpu


def _cdiv(a, b):
    return -(-a // b)


def _gsb_kernel(ego_ref, glin_ref, w1_ref, out_ref, *, n, d, approx):
    """ego_ref/out_ref: (1, TB, N*D) lane-dense blocks; glin_ref: (1, TB, D);
    w1_ref: (D, D) ego-side weight (constant index_map -> resident)."""
    glin = glin_ref[0].astype(jnp.float32)            # (TB, D) = guid @ W2^T + b
    w1 = w1_ref[...]                                  # (D, D), matmul dtype
    inv_d = 1.0 / d

    # Static unroll over the N tokens; each chunk is a (TB, D) lane-slice of
    # the dense VMEM block.  (For very large N this unrolls the IR; fine for
    # the token counts this module sees.)
    scores = []
    for i in range(n):
        ego_i = ego_ref[0, :, pl.ds(i * d, d)]        # (TB, D)
        # Ego half of Linear(2D->D): ego_i @ W1^T, contracting W1's last axis.
        lin_i = jax.lax.dot_general(
            ego_i.astype(w1.dtype), w1,
            dimension_numbers=(((1,), (1,)), ((), ())),
            preferred_element_type=jnp.float32)       # (TB, D) f32
        # Guidance half folded directly into the score (no `lin` tensor).
        s_i = jnp.sum((lin_i + glin) * ego_i.astype(jnp.float32),
                      axis=1, keepdims=True) * inv_d  # (TB, 1)
        scores.append(s_i)

    # Softmax over the token axis, kept as N per-token (TB, 1) columns (f32).
    m = scores[0]
    for s_i in scores[1:]:
        m = jnp.maximum(m, s_i)
    exps = [jnp.exp(s_i - m) for s_i in scores]
    tot = exps[0]
    for e_i in exps[1:]:
        tot = tot + e_i
    inv = pl.reciprocal(tot, approx=True) if approx else 1.0 / tot

    # Gate ego and write each chunk back into the dense output block.
    for i in range(n):
        ego_i = ego_ref[0, :, pl.ds(i * d, d)]
        out_ref[0, :, pl.ds(i * d, d)] = ((exps[i] * inv) * ego_i).astype(out_ref.dtype)


def _vmem_capacity_bytes():
    try:
        return int(pltpu.get_tpu_info().vmem_capacity_bytes)
    except Exception:
        return 64 * 1024 * 1024       # conservative default (v7x per-TC)


def _pick_batch_tile(B, N, D, budget_bytes, min_steps):
    """Batches per grid step.  The kernel is HBM-bandwidth bound, so:
    (a) make the block as big as an honest VMEM estimate allows (~8x the raw
        f32 ego block: double-buffered in/out + in-kernel f32/bf16 temps),
    (b) keep at least `min_steps` grid steps so BlockSpec double-buffering can
        overlap DMA with compute (and both v7x TensorCores see >= 2 steps).
    MXU fill is secondary here (mem-bound kernel)."""
    per_batch = 8 * N * D * 4
    max_tb = max(1, min(B, budget_bytes // per_batch))
    tb = max(1, min(max_tb, _cdiv(B, min_steps)))
    steps = _cdiv(B, tb)
    return _cdiv(B, steps)            # shrink to minimize padding at same steps


@functools.partial(jax.jit, static_argnames=("matmul_dtype",))
def guidance_selection_block(ego_feature, guidance_feature, weight, bias,
                             matmul_dtype=jnp.bfloat16):
    """ego_feature: (B, N, D), guidance_feature: (B, 1, D),
    weight: (D, 2D) [PyTorch Linear layout], bias: (D,)."""
    B, N, D = ego_feature.shape
    assert guidance_feature.shape == (B, 1, D)
    assert weight.shape == (D, 2 * D)
    assert bias.shape == (D,)

    # Hoisted guidance branch: guidance @ W2^T + bias (tiny GEMV, once in XLA).
    w2 = weight[:, D:]                                                 # (D, D)
    guid_lin = (jnp.einsum("bod,ed->boe", guidance_feature, w2)
                + bias).astype(jnp.float32)                            # (B,1,D)

    # Ego-side weight, un-transposed; the kernel contracts on its last axis.
    w1 = weight[:, :D].astype(matmul_dtype)                            # (D, D)

    # ---- per-generation tiling budgets ------------------------------------
    cap = _vmem_capacity_bytes()
    budget = min(cap // 2, 64 * 1024 * 1024)          # pipelined-footprint cap
    vmem_limit = min((cap * 3) // 4, 96 * 1024 * 1024)
    # 64-MiB part => v7x (2 TCs): require >= 2 steps per TensorCore.
    min_steps = 4 if cap <= 64 * 1024 * 1024 else 2
    tb = _pick_batch_tile(B, N, D, budget - 4 * D * D, min_steps)

    # ---- lane-dense HBM-facing layout: (B, N, D) -> (G, TB, N*D) -----------
    g = _cdiv(B, tb)
    bp = g * tb
    ego_p, glin_p = ego_feature, guid_lin
    if bp != B:                                        # non-divisible B: pad
        ego_p = jnp.pad(ego_p, ((0, bp - B), (0, 0), (0, 0)))
        glin_p = jnp.pad(glin_p, ((0, bp - B), (0, 0), (0, 0)))
    ego_r = ego_p.reshape(g, tb, N * D)
    glin_r = glin_p.reshape(g, tb, D)

    kernel = functools.partial(
        _gsb_kernel, n=N, d=D,
        approx=(np.dtype(matmul_dtype) != np.dtype(jnp.float32)))

    out = pl.pallas_call(
        kernel,
        out_shape=jax.ShapeDtypeStruct((g, tb, N * D), ego_feature.dtype),
        grid_spec=pltpu.PrefetchScalarGridSpec(
            num_scalar_prefetch=0,
            grid=(g,),
            in_specs=[
                pl.BlockSpec((1, tb, N * D), lambda i: (i, 0, 0)),  # ego (dense)
                pl.BlockSpec((1, tb, D), lambda i: (i, 0, 0)),      # guid_lin
                pl.BlockSpec((D, D), lambda i: (0, 0)),             # W1 resident
            ],
            out_specs=pl.BlockSpec((1, tb, N * D), lambda i: (i, 0, 0)),
        ),
        compiler_params=pltpu.CompilerParams(
            dimension_semantics=("parallel",),
            vmem_limit_bytes=int(vmem_limit),
        ),
    )(ego_r, glin_r, w1)

    out = out.reshape(bp, N, D)
    if bp != B:
        out = out[:B]
    return out


def _reference(ego, gd, weight, bias):
    """Plain-JAX reimplementation of the PyTorch forward, for verification."""
    B, N, D = ego.shape
    gd_rep = jnp.broadcast_to(gd, (B, N, D))
    cat = jnp.concatenate([ego, gd_rep], axis=2)                # (B, N, 2D)
    lin = jnp.einsum("bnk,dk->bnd", cat, weight) + bias         # (B, N, D)
    w = jnp.mean(lin * ego, axis=2)                             # (B, N)
    w = jax.nn.softmax(w, axis=1)[..., None]                    # (B, N, 1)
    return w * ego


def _make_inputs(key, B, N, D):
    k1, k2, k3, k4 = jax.random.split(key, 4)
    ego = jax.random.normal(k1, (B, N, D), dtype=jnp.float32)
    guidance = jax.random.normal(k2, (B, 1, D), dtype=jnp.float32)
    bound = 1.0 / jnp.sqrt(jnp.float32(2 * D))
    weight = jax.random.uniform(k3, (D, 2 * D), jnp.float32, -bound, bound)
    bias = jax.random.uniform(k4, (D,), jnp.float32, -bound, bound)
    return ego, guidance, weight, bias


if __name__ == "__main__":
    key = jax.random.PRNGKey(0)
    k_a, k_b = jax.random.split(key)

    # ---- main shape: B=4, N=8, D=32 ----------------------------------------
    B, N, D = 4, 8, 32
    ego, guidance, weight, bias = _make_inputs(k_a, B, N, D)
    ref = _reference(ego, guidance, weight, bias)

    # Exact path (f32 MXU operands, exact softmax division) — tight check.
    out_f32 = jax.block_until_ready(
        guidance_selection_block(ego, guidance, weight, bias,
                                 matmul_dtype=jnp.float32))
    assert out_f32.shape == (B, N, D)
    assert jnp.allclose(out_f32, ref, atol=2e-3, rtol=2e-3), "f32 path mismatch"

    # Default fast path (bf16 MXU operands, f32 accumulation / softmax).
    out = jax.block_until_ready(
        guidance_selection_block(ego, guidance, weight, bias))
    assert out.shape == (B, N, D)
    assert jnp.allclose(out, ref, atol=2e-2, rtol=2e-2), "bf16 path mismatch"

    # ---- awkward shape: non-divisible B, N % 8 != 0, tiny D -----------------
    B2, N2, D2 = 3, 5, 20
    ego2, guid2, w2_, b2_ = _make_inputs(k_b, B2, N2, D2)
    ref2 = _reference(ego2, guid2, w2_, b2_)
    out2 = jax.block_until_ready(
        guidance_selection_block(ego2, guid2, w2_, b2_))
    assert out2.shape == (B2, N2, D2)
    assert jnp.allclose(out2, ref2, atol=2e-2, rtol=2e-2), "padded path mismatch"

    print("KERNEL_OK")
</pallas_src>

<mosaic_0001>
module attributes {stable_mosaic.version = 11 : i64} {
  func.func @_gsb_kernel(%arg0: i32, %arg1: memref<1x1x256xf32, #tpu.memory_space<vmem>>, %arg2: memref<1x1x32xf32, #tpu.memory_space<vmem>>, %arg3: memref<32x32xf32, #tpu.memory_space<vmem>>, %arg4: memref<1x1x256xf32, #tpu.memory_space<vmem>>) attributes {dimension_semantics = [#tpu.dimension_semantics<parallel>], iteration_bounds = array<i64: 4>, scalar_prefetch = 0 : i64, scratch_operands = 0 : i64, tpu.core_type = #tpu.core_type<tc>, window_params = [{transform_indices = @transform_0, window_bounds = array<i64: 1, 1, 256>}, {transform_indices = @transform_1, window_bounds = array<i64: 1, 1, 32>}, {pipeline_mode = #tpu.pipeline_mode<synchronous>, transform_indices = @transform_2, window_bounds = array<i64: 32, 32>}, {transform_indices = @transform_3, window_bounds = array<i64: 1, 1, 256>}]} {
    %c0 = arith.constant 0 : index
    %c0_0 = arith.constant 0 : index
    %c0_1 = arith.constant 0 : index
    %0 = vector.load %arg2[%c0, %c0_0, %c0_1] : memref<1x1x32xf32, #tpu.memory_space<vmem>>, vector<1x1x32xf32>
    %1 = vector.shape_cast %0 : vector<1x1x32xf32> to vector<1x32xf32>
    %c0_2 = arith.constant 0 : index
    %c0_3 = arith.constant 0 : index
    %2 = vector.load %arg3[%c0_2, %c0_3] : memref<32x32xf32, #tpu.memory_space<vmem>>, vector<32x32xf32>
    %c0_4 = arith.constant 0 : index
    %c0_5 = arith.constant 0 : index
    %c0_6 = arith.constant 0 : index
    %3 = vector.load %arg1[%c0_4, %c0_5, %c0_6] : memref<1x1x256xf32, #tpu.memory_space<vmem>>, vector<1x1x32xf32>
    %4 = vector.shape_cast %3 : vector<1x1x32xf32> to vector<1x32xf32>
    %cst = arith.constant dense<0.000000e+00> : vector<1x32xf32>
    %5 = tpu.matmul %4, %2, %cst {dimension_numbers = #tpu.dot_dimension_numbers<[1], [1], [0], [0], [0, 0, 1, 0], [], []>} : vector<1x32xf32>, vector<32x32xf32>, vector<1x32xf32> -> vector<1x32xf32>
    %6 = arith.addf %5, %1 : vector<1x32xf32>
    %7 = arith.mulf %6, %4 : vector<1x32xf32>
    %cst_7 = arith.constant dense<0.000000e+00> : vector<1xf32>
    %8 = vector.multi_reduction <add>, %7, %cst_7 [1] : vector<1x32xf32> to vector<1xf32>
    %9 = vector.shape_cast %8 : vector<1xf32> to vector<1x1xf32>
    %cst_8 = arith.constant 3.125000e-02 : f32
    %10 = vector.broadcast %cst_8 : f32 to vector<1x1xf32>
    %11 = arith.mulf %9, %10 : vector<1x1xf32>
    %c0_9 = arith.constant 0 : index
    %c0_10 = arith.constant 0 : index
    %c32 = arith.constant 32 : index
    %12 = vector.load %arg1[%c0_9, %c0_10, %c32] : memref<1x1x256xf32, #tpu.memory_space<vmem>>, vector<1x1x32xf32>
    %13 = vector.shape_cast %12 : vector<1x1x32xf32> to vector<1x32xf32>
    %cst_11 = arith.constant dense<0.000000e+00> : vector<1x32xf32>
    %14 = tpu.matmul %13, %2, %cst_11 {dimension_numbers = #tpu.dot_dimension_numbers<[1], [1], [0], [0], [0, 0, 1, 0], [], []>} : vector<1x32xf32>, vector<32x32xf32>, vector<1x32xf32> -> vector<1x32xf32>
    %15 = arith.addf %14, %1 : vector<1x32xf32>
    %16 = arith.mulf %15, %13 : vector<1x32xf32>
    %cst_12 = arith.constant dense<0.000000e+00> : vector<1xf32>
    %17 = vector.multi_reduction <add>, %16, %cst_12 [1] : vector<1x32xf32> to vector<1xf32>
    %18 = vector.shape_cast %17 : vector<1xf32> to vector<1x1xf32>
    %cst_13 = arith.constant 3.125000e-02 : f32
    %19 = vector.broadcast %cst_13 : f32 to vector<1x1xf32>
    %20 = arith.mulf %18, %19 : vector<1x1xf32>
    %c0_14 = arith.constant 0 : index
    %c0_15 = arith.constant 0 : index
    %c64 = arith.constant 64 : index
    %21 = vector.load %arg1[%c0_14, %c0_15, %c64] : memref<1x1x256xf32, #tpu.memory_space<vmem>>, vector<1x1x32xf32>
    %22 = vector.shape_cast %21 : vector<1x1x32xf32> to vector<1x32xf32>
    %cst_16 = arith.constant dense<0.000000e+00> : vector<1x32xf32>
    %23 = tpu.matmul %22, %2, %cst_16 {dimension_numbers = #tpu.dot_dimension_numbers<[1], [1], [0], [0], [0, 0, 1, 0], [], []>} : vector<1x32xf32>, vector<32x32xf32>, vector<1x32xf32> -> vector<1x32xf32>
    %24 = arith.addf %23, %1 : vector<1x32xf32>
    %25 = arith.mulf %24, %22 : vector<1x32xf32>
    %cst_17 = arith.constant dense<0.000000e+00> : vector<1xf32>
    %26 = vector.multi_reduction <add>, %25, %cst_17 [1] : vector<1x32xf32> to vector<1xf32>
    %27 = vector.shape_cast %26 : vector<1xf32> to vector<1x1xf32>
    %cst_18 = arith.constant 3.125000e-02 : f32
    %28 = vector.broadcast %cst_18 : f32 to vector<1x1xf32>
    %29 = arith.mulf %27, %28 : vector<1x1xf32>
    %c0_19 = arith.constant 0 : index
    %c0_20 = arith.constant 0 : index
    %c96 = arith.constant 96 : index
    %30 = vector.load %arg1[%c0_19, %c0_20, %c96] : memref<1x1x256xf32, #tpu.memory_space<vmem>>, vector<1x1x32xf32>
    %31 = vector.shape_cast %30 : vector<1x1x32xf32> to vector<1x32xf32>
    %cst_21 = arith.constant dense<0.000000e+00> : vector<1x32xf32>
    %32 = tpu.matmul %31, %2, %cst_21 {dimension_numbers = #tpu.dot_dimension_numbers<[1], [1], [0], [0], [0, 0, 1, 0], [], []>} : vector<1x32xf32>, vector<32x32xf32>, vector<1x32xf32> -> vector<1x32xf32>
    %33 = arith.addf %32, %1 : vector<1x32xf32>
    %34 = arith.mulf %33, %31 : vector<1x32xf32>
    %cst_22 = arith.constant dense<0.000000e+00> : vector<1xf32>
    %35 = vector.multi_reduction <add>, %34, %cst_22 [1] : vector<1x32xf32> to vector<1xf32>
    %36 = vector.shape_cast %35 : vector<1xf32> to vector<1x1xf32>
    %cst_23 = arith.constant 3.125000e-02 : f32
    %37 = vector.broadcast %cst_23 : f32 to vector<1x1xf32>
    %38 = arith.mulf %36, %37 : vector<1x1xf32>
    %c0_24 = arith.constant 0 : index
    %c0_25 = arith.constant 0 : index
    %c128 = arith.constant 128 : index
    %39 = vector.load %arg1[%c0_24, %c0_25, %c128] : memref<1x1x256xf32, #tpu.memory_space<vmem>>, vector<1x1x32xf32>
    %40 = vector.shape_cast %39 : vector<1x1x32xf32> to vector<1x32xf32>
    %cst_26 = arith.constant dense<0.000000e+00> : vector<1x32xf32>
    %41 = tpu.matmul %40, %2, %cst_26 {dimension_numbers = #tpu.dot_dimension_numbers<[1], [1], [0], [0], [0, 0, 1, 0], [], []>} : vector<1x32xf32>, vector<32x32xf32>, vector<1x32xf32> -> vector<1x32xf32>
    %42 = arith.addf %41, %1 : vector<1x32xf32>
    %43 = arith.mulf %42, %40 : vector<1x32xf32>
    %cst_27 = arith.constant dense<0.000000e+00> : vector<1xf32>
    %44 = vector.multi_reduction <add>, %43, %cst_27 [1] : vector<1x32xf32> to vector<1xf32>
    %45 = vector.shape_cast %44 : vector<1xf32> to vector<1x1xf32>
    %cst_28 = arith.constant 3.125000e-02 : f32
    %46 = vector.broadcast %cst_28 : f32 to vector<1x1xf32>
    %47 = arith.mulf %45, %46 : vector<1x1xf32>
    %c0_29 = arith.constant 0 : index
    %c0_30 = arith.constant 0 : index
    %c160 = arith.constant 160 : index
    %48 = vector.load %arg1[%c0_29, %c0_30, %c160] : memref<1x1x256xf32, #tpu.memory_space<vmem>>, vector<1x1x32xf32>
    %49 = vector.shape_cast %48 : vector<1x1x32xf32> to vector<1x32xf32>
    %cst_31 = arith.constant dense<0.000000e+00> : vector<1x32xf32>
    %50 = tpu.matmul %49, %2, %cst_31 {dimension_numbers = #tpu.dot_dimension_numbers<[1], [1], [0], [0], [0, 0, 1, 0], [], []>} : vector<1x32xf32>, vector<32x32xf32>, vector<1x32xf32> -> vector<1x32xf32>
    %51 = arith.addf %50, %1 : vector<1x32xf32>
    %52 = arith.mulf %51, %49 : vector<1x32xf32>
    %cst_32 = arith.constant dense<0.000000e+00> : vector<1xf32>
    %53 = vector.multi_reduction <add>, %52, %cst_32 [1] : vector<1x32xf32> to vector<1xf32>
    %54 = vector.shape_cast %53 : vector<1xf32> to vector<1x1xf32>
    %cst_33 = arith.constant 3.125000e-02 : f32
    %55 = vector.broadcast %cst_33 : f32 to vector<1x1xf32>
    %56 = arith.mulf %54, %55 : vector<1x1xf32>
    %c0_34 = arith.constant 0 : index
    %c0_35 = arith.constant 0 : index
    %c192 = arith.constant 192 : index
    %57 = vector.load %arg1[%c0_34, %c0_35, %c192] : memref<1x1x256xf32, #tpu.memory_space<vmem>>, vector<1x1x32xf32>
    %58 = vector.shape_cast %57 : vector<1x1x32xf32> to vector<1x32xf32>
    %cst_36 = arith.constant dense<0.000000e+00> : vector<1x32xf32>
    %59 = tpu.matmul %58, %2, %cst_36 {dimension_numbers = #tpu.dot_dimension_numbers<[1], [1], [0], [0], [0, 0, 1, 0], [], []>} : vector<1x32xf32>, vector<32x32xf32>, vector<1x32xf32> -> vector<1x32xf32>
    %60 = arith.addf %59, %1 : vector<1x32xf32>
    %61 = arith.mulf %60, %58 : vector<1x32xf32>
    %cst_37 = arith.constant dense<0.000000e+00> : vector<1xf32>
    %62 = vector.multi_reduction <add>, %61, %cst_37 [1] : vector<1x32xf32> to vector<1xf32>
    %63 = vector.shape_cast %62 : vector<1xf32> to vector<1x1xf32>
    %cst_38 = arith.constant 3.125000e-02 : f32
    %64 = vector.broadcast %cst_38 : f32 to vector<1x1xf32>
    %65 = arith.mulf %63, %64 : vector<1x1xf32>
    %c0_39 = arith.constant 0 : index
    %c0_40 = arith.constant 0 : index
    %c224 = arith.constant 224 : index
    %66 = vector.load %arg1[%c0_39, %c0_40, %c224] : memref<1x1x256xf32, #tpu.memory_space<vmem>>, vector<1x1x32xf32>
    %67 = vector.shape_cast %66 : vector<1x1x32xf32> to vector<1x32xf32>
    %cst_41 = arith.constant dense<0.000000e+00> : vector<1x32xf32>
    %68 = tpu.matmul %67, %2, %cst_41 {dimension_numbers = #tpu.dot_dimension_numbers<[1], [1], [0], [0], [0, 0, 1, 0], [], []>} : vector<1x32xf32>, vector<32x32xf32>, vector<1x32xf32> -> vector<1x32xf32>
    %69 = arith.addf %68, %1 : vector<1x32xf32>
    %70 = arith.mulf %69, %67 : vector<1x32xf32>
    %cst_42 = arith.constant dense<0.000000e+00> : vector<1xf32>
    %71 = vector.multi_reduction <add>, %70, %cst_42 [1] : vector<1x32xf32> to vector<1xf32>
    %72 = vector.shape_cast %71 : vector<1xf32> to vector<1x1xf32>
    %cst_43 = arith.constant 3.125000e-02 : f32
    %73 = vector.broadcast %cst_43 : f32 to vector<1x1xf32>
    %74 = arith.mulf %72, %73 : vector<1x1xf32>
    %75 = arith.maximumf %11, %20 : vector<1x1xf32>
    %76 = arith.maximumf %75, %29 : vector<1x1xf32>
    %77 = arith.maximumf %76, %38 : vector<1x1xf32>
    %78 = arith.maximumf %77, %47 : vector<1x1xf32>
    %79 = arith.maximumf %78, %56 : vector<1x1xf32>
    %80 = arith.maximumf %79, %65 : vector<1x1xf32>
    %81 = arith.maximumf %80, %74 : vector<1x1xf32>
    %82 = arith.subf %11, %81 : vector<1x1xf32>
    %83 = math.exp %82 : vector<1x1xf32>
    %84 = arith.subf %20, %81 : vector<1x1xf32>
    %85 = math.exp %84 : vector<1x1xf32>
    %86 = arith.subf %29, %81 : vector<1x1xf32>
    %87 = math.exp %86 : vector<1x1xf32>
    %88 = arith.subf %38, %81 : vector<1x1xf32>
    %89 = math.exp %88 : vector<1x1xf32>
    %90 = arith.subf %47, %81 : vector<1x1xf32>
    %91 = math.exp %90 : vector<1x1xf32>
    %92 = arith.subf %56, %81 : vector<1x1xf32>
    %93 = math.exp %92 : vector<1x1xf32>
    %94 = arith.subf %65, %81 : vector<1x1xf32>
    %95 = math.exp %94 : vector<1x1xf32>
    %96 = arith.subf %74, %81 : vector<1x1xf32>
    %97 = math.exp %96 : vector<1x1xf32>
    %98 = arith.addf %83, %85 : vector<1x1xf32>
    %99 = arith.addf %98, %87 : vector<1x1xf32>
    %100 = arith.addf %99, %89 : vector<1x1xf32>
    %101 = arith.addf %100, %91 : vector<1x1xf32>
    %102 = arith.addf %101, %93 : vector<1x1xf32>
    %103 = arith.addf %102, %95 : vector<1x1xf32>
    %104 = arith.addf %103, %97 : vector<1x1xf32>
    %cst_44 = arith.constant 1.000000e+00 : f32
    %105 = vector.broadcast %cst_44 : f32 to vector<1x1xf32>
    %106 = arith.divf %105, %104 : vector<1x1xf32>
    %c0_45 = arith.constant 0 : index
    %c0_46 = arith.constant 0 : index
    %c0_47 = arith.constant 0 : index
    %107 = vector.load %arg1[%c0_45, %c0_46, %c0_47] : memref<1x1x256xf32, #tpu.memory_space<vmem>>, vector<1x1x32xf32>
    %108 = vector.shape_cast %107 : vector<1x1x32xf32> to vector<1x32xf32>
    %109 = arith.mulf %83, %106 : vector<1x1xf32>
    %110 = vector.broadcast %109 : vector<1x1xf32> to vector<1x32xf32>
    %111 = arith.mulf %110, %108 : vector<1x32xf32>
    %c0_48 = arith.constant 0 : index
    %c0_49 = arith.constant 0 : index
    %c0_50 = arith.constant 0 : index
    %112 = vector.load %arg4[%c0_48, %c0_49, %c0_50] : memref<1x1x256xf32, #tpu.memory_space<vmem>>, vector<1x1x32xf32>
    %113 = vector.shape_cast %112 : vector<1x1x32xf32> to vector<1x32xf32>
    %114 = vector.shape_cast %111 : vector<1x32xf32> to vector<1x1x32xf32>
    tpu.vector_store %arg4[%c0_48, %c0_49, %c0_50], %114 {strides = array<i32>} : memref<1x1x256xf32, #tpu.memory_space<vmem>>, vector<1x1x32xf32>,
    %c0_51 = arith.constant 0 : index
    %c0_52 = arith.constant 0 : index
    %c32_53 = arith.constant 32 : index
    %115 = vector.load %arg1[%c0_51, %c0_52, %c32_53] : memref<1x1x256xf32, #tpu.memory_space<vmem>>, vector<1x1x32xf32>
    %116 = vector.shape_cast %115 : vector<1x1x32xf32> to vector<1x32xf32>
    %117 = arith.mulf %85, %106 : vector<1x1xf32>
    %118 = vector.broadcast %117 : vector<1x1xf32> to vector<1x32xf32>
    %119 = arith.mulf %118, %116 : vector<1x32xf32>
    %c0_54 = arith.constant 0 : index
    %c0_55 = arith.constant 0 : index
    %c32_56 = arith.constant 32 : index
    %120 = vector.load %arg4[%c0_54, %c0_55, %c32_56] : memref<1x1x256xf32, #tpu.memory_space<vmem>>, vector<1x1x32xf32>
    %121 = vector.shape_cast %120 : vector<1x1x32xf32> to vector<1x32xf32>
    %122 = vector.shape_cast %119 : vector<1x32xf32> to vector<1x1x32xf32>
    tpu.vector_store %arg4[%c0_54, %c0_55, %c32_56], %122 {strides = array<i32>} : memref<1x1x256xf32, #tpu.memory_space<vmem>>, vector<1x1x32xf32>,
    %c0_57 = arith.constant 0 : index
    %c0_58 = arith.constant 0 : index
    %c64_59 = arith.constant 64 : index
    %123 = vector.load %arg1[%c0_57, %c0_58, %c64_59] : memref<1x1x256xf32, #tpu.memory_space<vmem>>, vector<1x1x32xf32>
    %124 = vector.shape_cast %123 : vector<1x1x32xf32> to vector<1x32xf32>
    %125 = arith.mulf %87, %106 : vector<1x1xf32>
    %126 = vector.broadcast %125 : vector<1x1xf32> to vector<1x32xf32>
    %127 = arith.mulf %126, %124 : vector<1x32xf32>
    %c0_60 = arith.constant 0 : index
    %c0_61 = arith.constant 0 : index
    %c64_62 = arith.constant 64 : index
    %128 = vector.load %arg4[%c0_60, %c0_61, %c64_62] : memref<1x1x256xf32, #tpu.memory_space<vmem>>, vector<1x1x32xf32>
    %129 = vector.shape_cast %128 : vector<1x1x32xf32> to vector<1x32xf32>
    %130 = vector.shape_cast %127 : vector<1x32xf32> to vector<1x1x32xf32>
    tpu.vector_store %arg4[%c0_60, %c0_61, %c64_62], %130 {strides = array<i32>} : memref<1x1x256xf32, #tpu.memory_space<vmem>>, vector<1x1x32xf32>,
    %c0_63 = arith.constant 0 : index
    %c0_64 = arith.constant 0 : index
    %c96_65 = arith.constant 96 : index
    %131 = vector.load %arg1[%c0_63, %c0_64, %c96_65] : memref<1x1x256xf32, #tpu.memory_space<vmem>>, vector<1x1x32xf32>
    %132 = vector.shape_cast %131 : vector<1x1x32xf32> to vector<1x32xf32>
    %133 = arith.mulf %89, %106 : vector<1x1xf32>
    %134 = vector.broadcast %133 : vector<1x1xf32> to vector<1x32xf32>
    %135 = arith.mulf %134, %132 : vector<1x32xf32>
    %c0_66 = arith.constant 0 : index
    %c0_67 = arith.constant 0 : index
    %c96_68 = arith.constant 96 : index
    %136 = vector.load %arg4[%c0_66, %c0_67, %c96_68] : memref<1x1x256xf32, #tpu.memory_space<vmem>>, vector<1x1x32xf32>
    %137 = vector.shape_cast %136 : vector<1x1x32xf32> to vector<1x32xf32>
    %138 = vector.shape_cast %135 : vector<1x32xf32> to vector<1x1x32xf32>
    tpu.vector_store %arg4[%c0_66, %c0_67, %c96_68], %138 {strides = array<i32>} : memref<1x1x256xf32, #tpu.memory_space<vmem>>, vector<1x1x32xf32>,
    %c0_69 = arith.constant 0 : index
    %c0_70 = arith.constant 0 : index
    %c128_71 = arith.constant 128 : index
    %139 = vector.load %arg1[%c0_69, %c0_70, %c128_71] : memref<1x1x256xf32, #tpu.memory_space<vmem>>, vector<1x1x32xf32>
    %140 = vector.shape_cast %139 : vector<1x1x32xf32> to vector<1x32xf32>
    %141 = arith.mulf %91, %106 : vector<1x1xf32>
    %142 = vector.broadcast %141 : vector<1x1xf32> to vector<1x32xf32>
    %143 = arith.mulf %142, %140 : vector<1x32xf32>
    %c0_72 = arith.constant 0 : index
    %c0_73 = arith.constant 0 : index
    %c128_74 = arith.constant 128 : index
    %144 = vector.load %arg4[%c0_72, %c0_73, %c128_74] : memref<1x1x256xf32, #tpu.memory_space<vmem>>, vector<1x1x32xf32>
    %145 = vector.shape_cast %144 : vector<1x1x32xf32> to vector<1x32xf32>
    %146 = vector.shape_cast %143 : vector<1x32xf32> to vector<1x1x32xf32>
    tpu.vector_store %arg4[%c0_72, %c0_73, %c128_74], %146 {strides = array<i32>} : memref<1x1x256xf32, #tpu.memory_space<vmem>>, vector<1x1x32xf32>,
    %c0_75 = arith.constant 0 : index
    %c0_76 = arith.constant 0 : index
    %c160_77 = arith.constant 160 : index
    %147 = vector.load %arg1[%c0_75, %c0_76, %c160_77] : memref<1x1x256xf32, #tpu.memory_space<vmem>>, vector<1x1x32xf32>
    %148 = vector.shape_cast %147 : vector<1x1x32xf32> to vector<1x32xf32>
    %149 = arith.mulf %93, %106 : vector<1x1xf32>
    %150 = vector.broadcast %149 : vector<1x1xf32> to vector<1x32xf32>
    %151 = arith.mulf %150, %148 : vector<1x32xf32>
    %c0_78 = arith.constant 0 : index
    %c0_79 = arith.constant 0 : index
    %c160_80 = arith.constant 160 : index
    %152 = vector.load %arg4[%c0_78, %c0_79, %c160_80] : memref<1x1x256xf32, #tpu.memory_space<vmem>>, vector<1x1x32xf32>
    %153 = vector.shape_cast %152 : vector<1x1x32xf32> to vector<1x32xf32>
    %154 = vector.shape_cast %151 : vector<1x32xf32> to vector<1x1x32xf32>
    tpu.vector_store %arg4[%c0_78, %c0_79, %c160_80], %154 {strides = array<i32>} : memref<1x1x256xf32, #tpu.memory_space<vmem>>, vector<1x1x32xf32>,
    %c0_81 = arith.constant 0 : index
    %c0_82 = arith.constant 0 : index
    %c192_83 = arith.constant 192 : index
    %155 = vector.load %arg1[%c0_81, %c0_82, %c192_83] : memref<1x1x256xf32, #tpu.memory_space<vmem>>, vector<1x1x32xf32>
    %156 = vector.shape_cast %155 : vector<1x1x32xf32> to vector<1x32xf32>
    %157 = arith.mulf %95, %106 : vector<1x1xf32>
    %158 = vector.broadcast %157 : vector<1x1xf32> to vector<1x32xf32>
    %159 = arith.mulf %158, %156 : vector<1x32xf32>
    %c0_84 = arith.constant 0 : index
    %c0_85 = arith.constant 0 : index
    %c192_86 = arith.constant 192 : index
    %160 = vector.load %arg4[%c0_84, %c0_85, %c192_86] : memref<1x1x256xf32, #tpu.memory_space<vmem>>, vector<1x1x32xf32>
    %161 = vector.shape_cast %160 : vector<1x1x32xf32> to vector<1x32xf32>
    %162 = vector.shape_cast %159 : vector<1x32xf32> to vector<1x1x32xf32>
    tpu.vector_store %arg4[%c0_84, %c0_85, %c192_86], %162 {strides = array<i32>} : memref<1x1x256xf32, #tpu.memory_space<vmem>>, vector<1x1x32xf32>,
    %c0_87 = arith.constant 0 : index
    %c0_88 = arith.constant 0 : index
    %c224_89 = arith.constant 224 : index
    %163 = vector.load %arg1[%c0_87, %c0_88, %c224_89] : memref<1x1x256xf32, #tpu.memory_space<vmem>>, vector<1x1x32xf32>
    %164 = vector.shape_cast %163 : vector<1x1x32xf32> to vector<1x32xf32>
    %165 = arith.mulf %97, %106 : vector<1x1xf32>
    %166 = vector.broadcast %165 : vector<1x1xf32> to vector<1x32xf32>
    %167 = arith.mulf %166, %164 : vector<1x32xf32>
    %c0_90 = arith.constant 0 : index
    %c0_91 = arith.constant 0 : index
    %c224_92 = arith.constant 224 : index
    %168 = vector.load %arg4[%c0_90, %c0_91, %c224_92] : memref<1x1x256xf32, #tpu.memory_space<vmem>>, vector<1x1x32xf32>
    %169 = vector.shape_cast %168 : vector<1x1x32xf32> to vector<1x32xf32>
    %170 = vector.shape_cast %167 : vector<1x32xf32> to vector<1x1x32xf32>
    tpu.vector_store %arg4[%c0_90, %c0_91, %c224_92], %170 {strides = array<i32>} : memref<1x1x256xf32, #tpu.memory_space<vmem>>, vector<1x1x32xf32>,
    return
  }
  func.func @transform_0(%arg0: i32) -> (i32, i32, i32) {
    %c0_i32 = arith.constant 0 : i32
    %c0_i32_0 = arith.constant 0 : i32
    %c0_i32_1 = arith.constant 0 : i32
    return %arg0, %c0_i32, %c0_i32_0 : i32, i32, i32
  }
  func.func @transform_1(%arg0: i32) -> (i32, i32, i32) {
    %c0_i32 = arith.constant 0 : i32
    %c0_i32_0 = arith.constant 0 : i32
    %c0_i32_1 = arith.constant 0 : i32
    return %arg0, %c0_i32, %c0_i32_0 : i32, i32, i32
  }
  func.func @transform_2(%arg0: i32) -> (i32, i32) {
    %c0_i32 = arith.constant 0 : i32
    %c0_i32_0 = arith.constant 0 : i32
    %c0_i32_1 = arith.constant 0 : i32
    return %c0_i32, %c0_i32_0 : i32, i32
  }
  func.func @transform_3(%arg0: i32) -> (i32, i32, i32) {
    %c0_i32 = arith.constant 0 : i32
    %c0_i32_0 = arith.constant 0 : i32
    %c0_i32_1 = arith.constant 0 : i32
    return %arg0, %c0_i32, %c0_i32_0 : i32, i32, i32
  }
}

</mosaic_0001>

<bundles_post_ra>
// kernel: guidance_selection_block.1
= control target key start
LH: loop header
LB: loop body
LE: loop exit
PB: predicated region body
PF: predicated region fallthrough
CT: control target
= control target key end

     0   :  { %s1462_s12 = smov 0   ;;  %s1709_s0 = inlined_call_operand.vmem [shape: f32[4,1,256], index: 0, kind: input, shape index: {}]   ;;  %s1710_s1 = inlined_call_operand.vmem [shape: f32[4,1,32], index: 1, kind: input, shape index: {}]   ;;  %s1711_s2 = inlined_call_operand.vmem [shape: f32[32,32], index: 2, kind: input, shape index: {}]   ;;  %s1712_s3 = inlined_call_operand.vmem [shape: f32[4,1,256], index: 3, kind: output, shape index: {}]  }
   0x1 LB: > { %s1147_s13 = sadd.s32 4294967295, %s1433_s12   ;;  %p1151_p0 = scmp.ge.s32.totalorder %s1433_s12, 1  ;;  %s1433_s12 = sphi %s1462_s12, %s13_s12  }
   0x2   : > { %p144_p1 = scmp.lt.s32.totalorder %s1433_s12, 5 }
   0x4   : > { %p145_p2 = pnand %p1151_p0, %p144_p1 }
   0x5   : > { %p169_p3 = scmp.lt.s32.totalorder (!%p145_p2), %s1147_s13, 3  ;;  %v278_v0 = vlaneseq (!%p145_p2)  ;;  %v181_v1 = vld [vmem:[%s1711_s2] sm:$0xff] (!%p145_p2)  ;;  %v1435_v2 = vmov (!%p145_p2), 0.0|0.0   ;;  %v182_v3 = vld [vmem:[%s1711_s2 + $0x8] sm:$0xff] (!%p145_p2)  ;;  %vm186_vm0 = vcmask (!%p145_p2), 261120   ;;  %v183_v8 = vld [vmem:[%s1711_s2 + $0x10] sm:$0xff] (!%p145_p2) }
   0x6   : > { %148 = sbr.rel (%p145_p2) target bundleno = 835 (0x343), region = 32  ;;  %1330 = vmatprep.subr.bf16.mxu0 (!%p145_p2), %v1435_v2  ;;  %1338 = vmatprep.subr.bf16.mxu1 (!%p145_p2), %v1435_v2  ;;  %v1483_v5 = vpack.c.bf16 (!%p145_p2), %v182_v3, %v181_v1  ;;  %vm1487_vm1 = vmpackc.low (!%p145_p2), %vm186_vm0, %vm186_vm0  ;;  %v184_v9 = vld [vmem:[%s1711_s2 + $0x18] sm:$0xff] (!%p145_p2)  ;;  %vm1436_vm2 = vmmov (!%p145_p2), 0   ;;  %v1437_v10 = vmov (!%p145_p2), 0.0   ;;  %s1438_s26 = smov (!%p145_p2), 96   ;;  %vm273_vm3 = vcmask (!%p145_p2), 253952  }
   0x7   : > { %v1481_v4 = vshrl.u32 (!%p145_p2), %v278_v0, 7  ;;  %1250 = vmatprep.mubr.msk.f32.mxu0 (!%p145_p2), %vm1436_vm2, %v1437_v10  ;;  %1261 = vmatprep.mubr.msk.f32.mxu1 (!%p145_p2), %vm1436_vm2, %v1437_v10  ;;  %v1335_v14 = vpack.c.bf16 (!%p145_p2), %v184_v9, %v183_v8  ;;  %s1439_s27 = smov (!%p145_p2), 32   ;;  %s1440_s28 = smov (!%p145_p2), 64   ;;  %vm889_vm4 = vcmp.lt.s32.totalorder (!%p145_p2), %v278_v0, 32  ;;  %vm1638_vm5 = vcmp.ge.s32.totalorder (!%p145_p2), %v278_v0, 32 }
   0x8   : > { %1333 = vmatpush3.bf16.xpose.msk.msra.mxu0 (!%p145_p2), %vm1487_vm1, %v1483_v5  ;;  %1341 = vmatpush3.bf16.xpose.msk.msra.mxu1 (!%p145_p2), %vm1487_vm1, %v1483_v5  ;;  %vm1643_vm6 = vcmp.lt.s32.totalorder (!%p145_p2), %v278_v0, 64  ;;  %vm1648_vm7 = vcmp.ge.s32.totalorder (!%p145_p2), %v278_v0, 64  ;;  %vm1653_vm8 = vcmp.lt.s32.totalorder (!%p145_p2), %v278_v0, 96  ;;  %vm1666_vm11 = vcmp.ge.s32.totalorder (!%p145_p2), %v278_v0, 96 }
   0x9   : > { %v280_v7 = vsub.s32 (!%p145_p2), 0, %v1481_v4  ;;  %1334 = vmatprep.subr.bf16.mxu0 (!%p145_p2), %v1435_v2  ;;  %1342 = vmatprep.subr.bf16.mxu1 (!%p145_p2), %v1435_v2  ;;  %vm923_vm9 = vmand (!%p145_p2), %vm1638_vm5, %vm1643_vm6  ;;  %vm1671_vm12 = vcmp.lt.s32.totalorder (!%p145_p2), %v278_v0, 128 }
   0xa   : > { %vm956_vm10 = vmand (!%p145_p2), %vm1648_vm7, %vm1653_vm8 }
   0xb   : > { %vm989_vm13 = vmand (!%p145_p2), %vm1666_vm11, %vm1671_vm12 }
   0xd   : > { %s1728_s13 = smov (!%p169_p3, %s1147_s13), 3 }
   0xe   : > { %s1152_s18 = sshll.u32 %s1728_s13, 1  ;;  %s175_s4 = scalar_lea.vmem %s1710_s1, %s1728_s13 }
   0xf   : > { %s1504_s21 = scalar_lea.vmem %s1709_s0, %s1152_s18  ;;  %v180_v22 = vld [vmem:[%s175_s4] sm:$0x1]  ;;  %s1623_s7 = scalar_lea.vmem %s1712_s3, %s1152_s18 }
  0x10   : > { %v1515_v11 = vld [vmem:[%s1504_s21] sm:$0x1]  ;;  %v1518_v12 = vld [vmem:[%s1504_s21 + $0x1] sm:$0x1]  ;;  %1337 = vmatpush3.bf16.xpose.msk.msra.mxu0 %vm1487_vm1, %v1335_v14  ;;  %1345 = vmatpush3.bf16.xpose.msk.msra.mxu1 %vm1487_vm1, %v1335_v14 }
  0x11   : > { %v281_v13 = vrot.slane %v1515_v11, %v280_v7  ;;  %v604_v15 = vrot.slane %v1518_v12, %v280_v7  ;;  %1346 = vmatprep.subr.bf16.mxu0 %v1435_v2  ;;  %1354 = vmatprep.subr.bf16.mxu1 %v1435_v2  ;;  %v1196_v63 = vld [vmem:[%s1504_s21] ss:$0 sm:$0xff]  ;;  %v1611_v1 = vld [vmem:[%s1504_s21 + $0x1] ss:$0 sm:$0xff] }
  0x13   : > { %282 = vrot.lane.b32.xlu0 %v281_v13, %s1438_s26  ;;  %442 = vrot.lane.b32.xlu1 %v281_v13, %s1439_s27 }
  0x17   : > { %362 = vrot.lane.b32.xlu0 %v281_v13, %s1440_s28  ;;  %605 = vrot.lane.b32.xlu1 %v604_v15, %s1438_s26 }
  0x18   : > { %1251 = vmatmul.mubr.msk.f32.vlgmr.msra.gmra.mrb[0].mxu0 %vm186_vm0, %v1515_v11 }
  0x19   : > { %1349 = vmatpush3.bf16.xpose.msk.msra.mxu0 %vm1487_vm1, %v1483_v5  ;;  %1272 = vmatprep.mubr.msk.f32.mxu0 %vm1436_vm2, %v1437_v10 }
  0x1a   : > { %1350 = vmatprep.subr.bf16.mxu0 %v1435_v2 }
  0x1b   : > { %685 = vrot.lane.b32.xlu0 %v604_v15, %s1440_s28  ;;  %765 = vrot.lane.b32.xlu1 %v604_v15, %s1439_s27 }
  0x21   : > { %1353 = vmatpush3.bf16.xpose.msk.msra.mxu0 %vm1487_vm1, %v1335_v14 }
  0x22   : > { %1362 = vmatprep.subr.bf16.mxu0 %v1435_v2 }
  0x85   : > { %v283_v16 = vpop.permute.xlu0 %282  ;;  %v443_v18 = vpop.permute.xlu1 %442 }
  0x86   : > { %1262 = vmatmul.mubr.msk.f32.vlgmr.msra.gmra.mrb[0].mxu1 %vm186_vm0, %v283_v16 }
  0x87   : > { %1357 = vmatpush3.bf16.xpose.msk.msra.mxu1 %vm1487_vm1, %v1483_v5  ;;  %1283 = vmatprep.mubr.msk.f32.mxu1 %vm1436_vm2, %v1437_v10 }
  0x88   : > { %1358 = vmatprep.subr.bf16.mxu1 %v1435_v2 }
  0x89   : > { %v363_v17 = vpop.permute.xlu0 %362  ;;  %v606_v19 = vpop.permute.xlu1 %605 }
  0x8a   : > { %1273 = vmatmul.mubr.msk.f32.vlgmr.msra.gmra.mrb[2].mxu0 %vm186_vm0, %v363_v17 }
  0x8b   : > { %1365 = vmatpush3.bf16.xpose.msk.msra.mxu0 %vm1487_vm1, %v1483_v5  ;;  %1294 = vmatprep.mubr.msk.f32.mxu0 %vm1436_vm2, %v1437_v10 }
  0x8c   : > { %1366 = vmatprep.subr.bf16.mxu0 %v1435_v2 }
  0x8d   : > { %v686_v20 = vpop.permute.xlu0 %685  ;;  %v766_v21 = vpop.permute.xlu1 %765 }
  0x8f   : > { %1361 = vmatpush3.bf16.xpose.msk.msra.mxu1 %vm1487_vm1, %v1335_v14 }
  0x90   : > { %1370 = vmatprep.subr.bf16.mxu1 %v1435_v2 }
  0x93   : > { %1369 = vmatpush3.bf16.xpose.msk.msra.mxu0 %vm1487_vm1, %v1335_v14 }
  0x94   : > { %1378 = vmatprep.subr.bf16.mxu0 %v1435_v2 }
  0x96   : > { %1284 = vmatmul.mubr.msk.f32.vlgmr.msra.gmra.mrb[2].mxu1 %vm186_vm0, %v443_v18 }
  0x97   : > { %1373 = vmatpush3.bf16.xpose.msk.msra.mxu1 %vm1487_vm1, %v1483_v5  ;;  %1305 = vmatprep.mubr.msk.f32.mxu1 %vm1436_vm2, %v1437_v10 }
  0x98   : > { %1374 = vmatprep.subr.bf16.mxu1 %v1435_v2 }
  0x9a   : > { %1295 = vmatmul.mubr.msk.f32.vlgmr.msra.gmra.mrb[4].mxu0 %vm186_vm0, %v1518_v12 }
  0x9b   : > { %1381 = vmatpush3.bf16.xpose.msk.msra.mxu0 %vm1487_vm1, %v1483_v5  ;;  %1316 = vmatprep.mubr.msk.f32.mxu0 %vm1436_vm2, %v1437_v10 }
  0x9c   : > { %1382 = vmatprep.subr.bf16.mxu0 %v1435_v2 }
  0x9f   : > { %1377 = vmatpush3.bf16.xpose.msk.msra.mxu1 %vm1487_vm1, %v1335_v14 }
  0xa0   : > { %1386 = vmatprep.subr.bf16.mxu1 %v1435_v2 }
  0xa3   : > { %1385 = vmatpush3.bf16.xpose.msk.msra.mxu0 %vm1487_vm1, %v1335_v14 }
  0xa6   : > { %1306 = vmatmul.mubr.msk.f32.vlgmr.msra.gmra.mrb[4].mxu1 %vm186_vm0, %v606_v19 }
  0xa7   : > { %1389 = vmatpush3.bf16.xpose.msk.msra.mxu1 %vm1487_vm1, %v1483_v5  ;;  %1327 = vmatprep.mubr.msk.f32.mxu1 %vm1436_vm2, %v1437_v10 }
  0xa8   : > { %1390 = vmatprep.subr.bf16.mxu1 %v1435_v2 }
  0xaa   : > { %1317 = vmatmul.mubr.msk.f32.vlgmr.msra.gmra.mrb[6].mxu0 %vm186_vm0, %v686_v20 }
  0xaf   : > { %1393 = vmatpush3.bf16.xpose.msk.msra.mxu1 %vm1487_vm1, %v1335_v14 }
  0xb6   : > { %1328 = vmatmul.mubr.msk.f32.vlgmr.msra.gmra.mrb[6].mxu1 %vm186_vm0, %v766_v21 }
  0xeb   : > { %v268_v23 = vpop.f32.mrb[0].mxu0 }
  0xec   : > { %v269_v24 = vadd.f32 %v268_v23, %v180_v22  ;;  %v1252_v25 = vpop.f32.mrb[1].mxu0 }
  0xee   : > { %v272_v26 = vmul.f32 %v269_v24, %v1515_v11 }
  0xf0   : > { %v274_v27 = vsel %vm273_vm3, %v272_v26, 0.0 }
  0xf1   : > { %275 = vadd.xlane.f32.xlu0 %v274_v27 }
 0x159   : > { %v352_v28 = vpop.f32.mrb[0].mxu1 }
 0x15a   : > { %v353_v29 = vadd.f32 %v352_v28, %v180_v22  ;;  %v1263_v30 = vpop.f32.mrb[1].mxu1 }
 0x15c   : > { %v357_v31 = vmul.f32 %v353_v29, %v283_v16 }
 0x15d   : > { %v432_v32 = vpop.f32.mrb[2].mxu0 }
 0x15e   : > { %v433_v33 = vadd.f32 %v432_v32, %v180_v22  ;;  %v358_v34 = vsel %vm273_vm3, %v357_v31, 0.0  ;;  %v1274_v35 = vpop.f32.mrb[3].mxu0 }
 0x15f   : > { %359 = vadd.xlane.f32.xlu1 %v358_v34 }
 0x160   : > { %v437_v36 = vmul.f32 %v433_v33, %v363_v17 }
 0x162   : > { %v438_v37 = vsel %vm273_vm3, %v437_v36, 0.0 }
 0x163   : > { %439 = vadd.xlane.f32.xlu0 %v438_v37 }
 0x169   : > { %v512_v38 = vpop.f32.mrb[2].mxu1 }
 0x16a   : > { %v513_v39 = vadd.f32 %v512_v38, %v180_v22  ;;  %v1285_v40 = vpop.f32.mrb[3].mxu1 }
 0x16c   : > { %v517_v41 = vmul.f32 %v513_v39, %v443_v18 }
 0x16d   : > { %v592_v42 = vpop.f32.mrb[4].mxu0 }
 0x16e   : > { %v593_v43 = vadd.f32 %v592_v42, %v180_v22  ;;  %v518_v44 = vsel %vm273_vm3, %v517_v41, 0.0  ;;  %v1296_v45 = vpop.f32.mrb[5].mxu0 }
 0x16f   : > { %519 = vadd.xlane.f32.xlu0 %v518_v44 }
 0x170   : > { %v596_v46 = vmul.f32 %v593_v43, %v1518_v12 }
 0x172   : > { %v597_v47 = vsel %vm273_vm3, %v596_v46, 0.0 }
 0x173   : > { %598 = vadd.xlane.f32.xlu1 %v597_v47 }
 0x179   : > { %v675_v48 = vpop.f32.mrb[4].mxu1 }
 0x17a   : > { %v676_v49 = vadd.f32 %v675_v48, %v180_v22  ;;  %v1307_v50 = vpop.f32.mrb[5].mxu1 }
 0x17c   : > { %v680_v51 = vmul.f32 %v676_v49, %v606_v19 }
 0x17d   : > { %v755_v52 = vpop.f32.mrb[6].mxu0 }
 0x17e   : > { %v756_v53 = vadd.f32 %v755_v52, %v180_v22  ;;  %v681_v54 = vsel %vm273_vm3, %v680_v51, 0.0  ;;  %v1318_v55 = vpop.f32.mrb[7].mxu0  ;;  %v276_v2 = vpop.xlane.xlu0 %275 }
 0x17f   : > { %682 = vadd.xlane.f32.xlu0 %v681_v54  ;;  %v277_v8 = vmul.f32 0.03125, %v276_v2 }
 0x180   : > { %v760_v56 = vmul.f32 %v756_v53, %v686_v20 }
 0x182   : > { %v761_v57 = vsel %vm273_vm3, %v760_v56, 0.0 }
 0x183   : > { %762 = vadd.xlane.f32.xlu1 %v761_v57 }
 0x189   : > { %v835_v58 = vpop.f32.mrb[6].mxu1 }
 0x18a   : > { %v836_v59 = vadd.f32 %v835_v58, %v180_v22  ;;  %v1329_v60 = vpop.f32.mrb[7].mxu1  ;;  %v1441_v58 = vmov 1966171168  }
 0x18c   : > { %v840_v61 = vmul.f32 %v836_v59, %v766_v21  ;;  %v905_v59 = vunpack.c.l.s4 %v1441_v58 }
 0x18e   : > { %v841_v62 = vsel %vm273_vm3, %v840_v61, 0.0  ;;  %v906_v61 = vunpack.c.0.s8 %v905_v59 }
 0x18f   : > { %842 = vadd.xlane.f32.xlu0 %v841_v62 }
 0x190   : > { %v909_v2 = vsub.s32 %v906_v61, %v1481_v4  ;;  %v991_v4 = vld [vmem:[%s1504_s21 + $0x1] sm:$0x1] }
 0x194   : > { %899 = vrot.lane.b32.xlu1 %v1196_v63, %s1438_s26 }
 0x198   : > { %932 = vrot.lane.b32.xlu1 %v1196_v63, %s1440_s28 }
 0x1a5   : > { %965 = vrot.lane.b32.xlu0 %v1196_v63, %s1439_s27 }
 0x1a9   : > { %1002 = vrot.lane.b32.xlu0 %v1611_v1, %s1438_s26 }
 0x1ad   : > { %1032 = vrot.lane.b32.xlu0 %v1611_v1, %s1440_s28 }
 0x1ec   : > { %v360_v3 = vpop.xlane.xlu1 %359 }
 0x1ed   : > { %v361_v6 = vmul.f32 0.03125, %v360_v3 }
 0x1ef   : > { %v845_v12 = vmax.f32 %v277_v8, %v361_v6 }
 0x1f0   : > { %v440_v5 = vpop.xlane.xlu0 %439 }
 0x1f1   : > { %v441_v9 = vmul.f32 0.03125, %v440_v5 }
 0x1f3   : > { %v846_v15 = vmax.f32 %v845_v12, %v441_v9 }
 0x1fc   : > { %v520_v7 = vpop.xlane.xlu0 %519 }
 0x1fd   : > { %v521_v13 = vmul.f32 0.03125, %v520_v7 }
 0x1ff   : > { %v847_v18 = vmax.f32 %v846_v15, %v521_v13 }
 0x200   : > { %v599_v10 = vpop.xlane.xlu1 %598 }
 0x201   : > { %v600_v16 = vmul.f32 0.03125, %v599_v10 }
 0x203   : > { %v848_v20 = vmax.f32 %v847_v18, %v600_v16 }
 0x20c   : > { %v683_v14 = vpop.xlane.xlu0 %682 }
 0x20d   : > { %v684_v19 = vmul.f32 0.03125, %v683_v14 }
 0x20f   : > { %v849_v22 = vmax.f32 %v848_v20, %v684_v19 }
 0x210   : > { %v763_v17 = vpop.xlane.xlu1 %762 }
 0x211   : > { %v764_v21 = vmul.f32 0.03125, %v763_v17 }
 0x213   : > { %v850_v24 = vmax.f32 %v849_v22, %v764_v21 }
 0x214   : > { %v900_v60 = vpop.permute.xlu1 %899 }
 0x21c   : > { %v843_v23 = vpop.xlane.xlu0 %842 }
 0x21d   : > { %v844_v25 = vmul.f32 0.03125, %v843_v23 }
 0x21f   : > { %v851_v26 = vmax.f32 %v850_v24, %v844_v25 }
 0x220   : > { %v966_v62 = vpop.permute.xlu0 %965 }
 0x221   : > { %v852_v27 = vsub.f32 %v277_v8, %v851_v26  ;;  %v855_v28 = vsub.f32 %v361_v6, %v851_v26  ;;  %v858_v29 = vsub.f32 %v441_v9, %v851_v26  ;;  %v861_v33 = vsub.f32 %v521_v13, %v851_v26  ;;  %v933_v6 = vpop.permute.xlu1 %932 }
 0x222   : > { %v864_v34 = vsub.f32 %v600_v16, %v851_v26  ;;  %v867_v35 = vsub.f32 %v684_v19, %v851_v26  ;;  %v870_v38 = vsub.f32 %v764_v21, %v851_v26  ;;  %v873_v40 = vsub.f32 %v844_v25, %v851_v26 }
 0x223   : > { %v853_v30 = vmul.f32 1.442695, %v852_v27  ;;  %v856_v31 = vmul.f32 1.442695, %v855_v28  ;;  %v859_v32 = vmul.f32 1.442695, %v858_v29 }
 0x224   : > { %v862_v36 = vmul.f32 1.442695, %v861_v33  ;;  %v865_v37 = vmul.f32 1.442695, %v864_v34  ;;  %v868_v39 = vmul.f32 1.442695, %v867_v35  ;;  %v1003_v10 = vpop.permute.xlu0 %1002 }
 0x225   : > { %1409 = vpow2.f32 %v853_v30  ;;  %v871_v41 = vmul.f32 1.442695, %v870_v38  ;;  %v874_v44 = vmul.f32 1.442695, %v873_v40 }
 0x226   : > { %1411 = vpow2.f32 %v856_v31 }
 0x227   : > { %1413 = vpow2.f32 %v859_v32 }
 0x228   : > { %1415 = vpow2.f32 %v862_v36  ;;  %v1033_v26 = vpop.permute.xlu0 %1032 }
 0x229   : > { %1417 = vpow2.f32 %v865_v37 }
 0x22a   : > { %1419 = vpow2.f32 %v868_v39 }
 0x22b   : > { %1421 = vpow2.f32 %v871_v41 }
 0x22c   : > { %1423 = vpow2.f32 %v874_v44 }
 0x22f   : > { %v1410_v42 = vpop.eup %1409 }
 0x230   : > { %v1412_v43 = vpop.eup %1411 }
 0x231   : > { %v876_v45 = vadd.f32 %v1412_v43, %v1410_v42  ;;  %v1414_v46 = vpop.eup %1413 }
 0x232   : > { %v1416_v48 = vpop.eup %1415 }
 0x233   : > { %v877_v47 = vadd.f32 %v1414_v46, %v876_v45  ;;  %v1418_v50 = vpop.eup %1417 }
 0x234   : > { %v1420_v52 = vpop.eup %1419 }
 0x235   : > { %v878_v49 = vadd.f32 %v1416_v48, %v877_v47  ;;  %v1422_v54 = vpop.eup %1421 }
 0x236   : > { %v1424_v56 = vpop.eup %1423 }
 0x237   : > { %v879_v51 = vadd.f32 %v1418_v50, %v878_v49 }
 0x239   : > { %v880_v53 = vadd.f32 %v1420_v52, %v879_v51 }
 0x23b   : > { %v881_v55 = vadd.f32 %v1422_v54, %v880_v53 }
 0x23d   : > { %v882_v57 = vadd.f32 %v1424_v56, %v881_v55 }
 0x23f   : > { %1425 = vrcp.f32 %v882_v57 }
 0x249   : > { %v1426_v63 = vpop.eup %1425 }
 0x24a   : > { %v959_v3 = vmul.f32 %v1426_v63, %v1416_v48  ;;  %v893_v5 = vmul.f32 %v1426_v63, %v1412_v43  ;;  %v926_v7 = vmul.f32 %v1426_v63, %v1414_v46  ;;  %v885_v8 = vmul.f32 %v1426_v63, %v1410_v42 }
 0x24b   : > { %v1056_v9 = vmul.f32 %v1426_v63, %v1424_v56  ;;  %v996_v12 = vmul.f32 %v1426_v63, %v1420_v52  ;;  %v992_v17 = vmul.f32 %v1426_v63, %v1418_v50  ;;  %v1026_v24 = vmul.f32 %v1426_v63, %v1422_v54 }
 0x24c   : > { %v902_v13 = vmul.f32 %v900_v60, %v893_v5  ;;  %v968_v14 = vmul.f32 %v966_v62, %v959_v3  ;;  %v935_v15 = vmul.f32 %v933_v6, %v926_v7  ;;  %v886_v16 = vmul.f32 %v885_v8, %v1515_v11 }
 0x24d   : > { %v993_v20 = vmul.f32 %v992_v17, %v991_v4  ;;  %v1005_v23 = vmul.f32 %v1003_v10, %v996_v12  ;;  %v1035_v28 = vmul.f32 %v1033_v26, %v1026_v24 }
 0x24e   : > { %v910_v18 = vrot.slane %v902_v13, %v909_v2  ;;  %v943_v19 = vrot.slane %v935_v15, %v909_v2  ;;  %891 = vst.msk [vmem:[%s1623_s7] sm:$0x1] %vm889_vm4, %v886_v16  ;;  %v976_v22 = vrot.slane %v968_v14, %v909_v2 }
 0x24f   : > { %994 = vst.msk [vmem:[%s1623_s7 + $0x1] sm:$0x1] %vm889_vm4, %v993_v20  ;;  %v1013_v27 = vrot.slane %v1005_v23, %v909_v2  ;;  %v1043_v11 = vrot.slane %v1035_v28, %v909_v2 }
 0x250   : > { %v917_v21 = vrot.slane %v910_v18, %v909_v2  ;;  %v950_v25 = vrot.slane %v943_v19, %v909_v2  ;;  %v983_v29 = vrot.slane %v976_v22, %v909_v2 }
 0x251   : > { %v1020_v30 = vrot.slane %v1013_v27, %v909_v2  ;;  %v1050_v31 = vrot.slane %v1043_v11, %v909_v2 }
 0x252   : > { %918 = vrot.lane.b32.xlu0 %v917_v21, %s1439_s27  ;;  %951 = vrot.lane.b32.xlu1 %v950_v25, %s1440_s28 }
 0x256   : > { %1062 = vrot.lane.b32.xlu0 %v1611_v1, %s1439_s27  ;;  %984 = vrot.lane.b32.xlu1 %v983_v29, %s1438_s26 }
 0x25a   : > { %1021 = vrot.lane.b32.xlu1 %v1020_v30, %s1439_s27 }
 0x25e   : > { %1051 = vrot.lane.b32.xlu1 %v1050_v31, %s1440_s28 }
 0x2c4   : > { %v919_v35 = vpop.permute.xlu0 %918  ;;  %v952_v38 = vpop.permute.xlu1 %951 }
 0x2c5   : > { %924 = vst.msk [vmem:[%s1623_s7] sm:$0x1] %vm923_vm9, %v919_v35 }
 0x2c6   : > { %957 = vst.msk [vmem:[%s1623_s7] sm:$0x1] %vm956_vm10, %v952_v38 }
 0x2c8   : > { %v1063_v0 = vpop.permute.xlu0 %1062  ;;  %v985_v40 = vpop.permute.xlu1 %984 }
 0x2c9   : > { %v1065_v39 = vmul.f32 %v1063_v0, %v1056_v9  ;;  %990 = vst.msk [vmem:[%s1623_s7] sm:$0x1] %vm989_vm13, %v985_v40 }
 0x2cb   : > { %v1073_v41 = vrot.slane %v1065_v39, %v909_v2 }
 0x2cc   : > { %v1022_v42 = vpop.permute.xlu1 %1021 }
 0x2cd   : > { %v1080_v43 = vrot.slane %v1073_v41, %v909_v2  ;;  %1024 = vst.msk [vmem:[%s1623_s7 + $0x1] sm:$0x1] %vm923_vm9, %v1022_v42 }
 0x2cf   : > { %1081 = vrot.lane.b32.xlu1 %v1080_v43, %s1438_s26 }
 0x2d0   : > { %v1052_v44 = vpop.permute.xlu1 %1051 }
 0x2d1   : > { %1054 = vst.msk [vmem:[%s1623_s7 + $0x1] sm:$0x1] %vm956_vm10, %v1052_v44 }
 0x341   : > { %v1082_v45 = vpop.permute.xlu1 %1081 }
 0x342   : > { %1084 = vst.msk [vmem:[%s1623_s7 + $0x1] sm:$0x1] %vm989_vm13, %v1082_v45 }
 0x343 PF: > { %s13_s12 = sadd.s32 1, %s1433_s12  }
 0x344   : > { %p10_p4 = scmp.ge.s32.totalorder %s13_s12, 6  }
 0x346   :  { %12 = sbr.rel (!%p10_p4) target bundleno = 1 (0x1), region = 65 }

</bundles_post_ra>
